<compile_context>
chip_gen: v7x
topology: tpu7x:2x2x1
jax: 0.10.0
libtpu: 0.0.40
codegen_flags: <defaults>
</compile_context>

<pallas_src>
import jax
import jax.numpy as jnp
from jax.experimental import pallas as pl
from jax.experimental.pallas import tpu as pltpu

_LANES = 128


def _coxph_kernel(inv_ref, x_ref, out_ref, carry_ref, loss_ref, nev_ref):
    """One grid step processes a (TILE_C, 128) tile of samples.

    inv_ref   : (1,1) f32 in SMEM  -- 1 / max(||risk||_2, 1e-12)
    x_ref     : (2, TILE_C, 128) f32 in VMEM -- plane 0 = risk, plane 1 = censors
    out_ref   : (1,1) f32 output (written at the last grid step)
    carry_ref : (1,1) f32 scratch -- running cumsum carry from previous tiles
    loss_ref  : (1,1) f32 scratch -- running sum of censored log-likelihood
    nev_ref   : (1,1) f32 scratch -- running count of events (nonzero censors)
    """
    t = pl.program_id(0)

    @pl.when(t == 0)
    def _init():
        carry_ref[...] = jnp.zeros_like(carry_ref)
        loss_ref[...] = jnp.zeros_like(loss_ref)
        nev_ref[...] = jnp.zeros_like(nev_ref)

    inv_norm = inv_ref[0, 0]                       # scalar read from SMEM
    r = x_ref[0]                                   # (TILE_C, 128)
    c = x_ref[1]                                   # (TILE_C, 128)
    tile_c, lanes = r.shape                        # static

    # ---- riskmax = risk * (1 / max(||risk||, 1e-12))
    riskmax = r * inv_norm
    e = jnp.exp(riskmax)                           # EUP; pads (r=0) give 1, masked later

    # ---- within-chunk (lane-wise) inclusive prefix:  within[c,l] = sum_{j<=l} e[c,j]
    li = jax.lax.broadcasted_iota(jnp.int32, (lanes, lanes), 0)
    lj = jax.lax.broadcasted_iota(jnp.int32, (lanes, lanes), 1)
    tri = (li <= lj).astype(jnp.float32)           # (128,128) upper-tri incl. diag
    within = jnp.dot(e, tri, preferred_element_type=jnp.float32,
                     precision=jax.lax.Precision.HIGHEST)      # (TILE_C, 128)

    # ---- cross-chunk carry inside the tile: exclusive prefix of chunk totals,
    #      via a constant-size (TILE_C, TILE_C) strict-lower triangle (O(1) memory).
    ri = jax.lax.broadcasted_iota(jnp.int32, (tile_c, tile_c), 0)
    rj = jax.lax.broadcasted_iota(jnp.int32, (tile_c, tile_c), 1)
    strict = (rj < ri).astype(jnp.float32)
    row_carry = jnp.dot(strict, within, preferred_element_type=jnp.float32,
                        precision=jax.lax.Precision.HIGHEST)[:, lanes - 1:lanes]  # (TILE_C,1)

    # ---- global cumsum value = running carry + in-tile row carry + in-row prefix
    cum = within + row_carry + carry_ref[...]
    log_risk = jnp.log(cum)

    # ---- accumulate loss terms and event count (pads have c == 0)
    per_row = jnp.sum((riskmax - log_risk) * c, axis=1, keepdims=True)    # (TILE_C,1)
    loss_ref[...] += jnp.sum(per_row, axis=0, keepdims=True)              # (1,1)
    ev_per_row = jnp.sum((c != 0.0).astype(jnp.float32), axis=1, keepdims=True)
    nev_ref[...] += jnp.sum(ev_per_row, axis=0, keepdims=True)

    # ---- advance the running carry by this tile's total sum of exp(riskmax)
    carry_ref[...] += jnp.sum(within[:, lanes - 1:lanes], axis=0, keepdims=True)

    @pl.when(t == pl.num_programs(0) - 1)
    def _finalize():
        # Matches the PyTorch reference (divides by #nonzero censors; inf/NaN if zero).
        out_ref[...] = -loss_ref[...] / nev_ref[...]


def _round_up(x, m):
    return ((x + m - 1) // m) * m


def coxph_loss(risk, phase, censors, *, tile_chunks=None):
    """Pallas implementation of the PyTorch coxph_loss.forward.

    risk:    (N,) or (N, 1) risk scores.
    phase:   unused (signature parity with the PyTorch module).
    censors: (N,) or (N, 1) event indicators.
    tile_chunks: optional override of the number of 128-sample chunks per grid
      tile (multiple of 8).  Default: single tile for small N, 64 chunks
      (8192 samples) per tile for large N.
    Returns a scalar float32 loss.
    """
    del phase  # unused by the reference forward
    r = jnp.asarray(risk, jnp.float32).reshape(-1)
    c = jnp.asarray(censors, jnp.float32).reshape(-1)
    n = r.shape[0]

    # Global L2-norm scale (single XLA reduction in the wrapper, per review):
    # 1 / max(||r||_2, 1e-12) == rsqrt(max(sum(r^2), 1e-24)).
    sq = jnp.sum(r * r)
    inv_norm = jax.lax.rsqrt(jnp.maximum(sq, jnp.float32(1e-24)))
    inv_norm = inv_norm.reshape(1, 1).astype(jnp.float32)

    n_chunks = pl.cdiv(n, _LANES)
    if tile_chunks is None:
        tile_chunks = _round_up(n_chunks, 8) if n_chunks <= 64 else 64
    else:
        tile_chunks = _round_up(max(int(tile_chunks), 8), 8)
    num_tiles = pl.cdiv(n_chunks, tile_chunks)
    n_padded = num_tiles * tile_chunks * _LANES

    pad = n_padded - n
    if pad:
        # Trailing zero-pads: masked by censor == 0, add nothing to the norm
        # or the event count, and only affect cumsum entries at padded positions.
        r = jnp.pad(r, (0, pad))
        c = jnp.pad(c, (0, pad))

    # Single merged input: plane 0 = risk, plane 1 = censors -> one DMA window.
    x = jnp.stack(
        [r.reshape(num_tiles * tile_chunks, _LANES),
         c.reshape(num_tiles * tile_chunks, _LANES)],
        axis=0,
    )

    cost = pl.CostEstimate(
        flops=int(num_tiles * (2 * tile_chunks * _LANES * _LANES
                               + 2 * tile_chunks * tile_chunks * _LANES)),
        transcendentals=int(2 * n_padded),
        bytes_accessed=int(2 * n_padded * 4 + 8),
    )

    out = pl.pallas_call(
        _coxph_kernel,
        grid=(num_tiles,),
        out_shape=jax.ShapeDtypeStruct((1, 1), jnp.float32),
        in_specs=[
            pl.BlockSpec(memory_space=pltpu.MemorySpace.SMEM),              # inv_norm
            pl.BlockSpec((2, tile_chunks, _LANES), lambda i: (0, i, 0)),    # [risk;cens]
        ],
        out_specs=pl.BlockSpec((1, 1), lambda i: (0, 0)),
        scratch_shapes=[
            pltpu.VMEM((1, 1), jnp.float32),   # running cumsum carry
            pltpu.VMEM((1, 1), jnp.float32),   # loss-sum accumulator
            pltpu.VMEM((1, 1), jnp.float32),   # event-count accumulator
        ],
        compiler_params=pltpu.CompilerParams(dimension_semantics=("arbitrary",)),
        cost_estimate=cost,
    )(inv_norm, x)
    return out[0, 0]


def _coxph_loss_ref(risk, censors):
    # Pure-JAX reference mirroring the PyTorch code.
    r = jnp.asarray(risk, jnp.float32).reshape(-1, 1)
    c = jnp.asarray(censors, jnp.float32).reshape(-1, 1)
    riskmax = r / jnp.maximum(jnp.linalg.norm(r, axis=0, keepdims=True), 1e-12)
    log_risk = jnp.log(jnp.cumsum(jnp.exp(riskmax), axis=0))
    censored = (riskmax - log_risk) * c
    return -jnp.sum(censored) / jnp.sum(c != 0.0).astype(jnp.float32)


if __name__ == "__main__":
    key = jax.random.PRNGKey(0)
    # n=8    : single tile, heavy lane padding.
    # n=300  : single tile, multiple 128-chunks + padding.
    # n=3000 : tile_chunks=8 forces 3 grid tiles -> exercises the running
    #          cross-tile cumsum carry and the sequential grid.
    cases = [(8, None), (300, None), (3000, 8)]
    for n, tile_chunks in cases:
        key, k1, k2 = jax.random.split(key, 3)
        risk = jax.random.normal(k1, (n, 1), dtype=jnp.float32)
        censors = (jax.random.uniform(k2, (n,)) < 0.6).astype(jnp.float32)
        censors = censors.at[0].set(1.0)  # ensure at least one event
        phase = jnp.zeros((n,), dtype=jnp.float32)  # unused by the forward

        loss = jax.block_until_ready(
            coxph_loss(risk, phase, censors, tile_chunks=tile_chunks))
        ref = jax.block_until_ready(_coxph_loss_ref(risk, censors))
        assert jnp.allclose(loss, ref, rtol=1e-5, atol=1e-5), (n, loss, ref)

    print("KERNEL_OK")
</pallas_src>

<mosaic_0001>
module attributes {stable_mosaic.version = 11 : i64} {
  func.func @_coxph_kernel(%arg0: i32, %arg1: memref<1x1xf32, #tpu.memory_space<smem>>, %arg2: memref<2x8x128xf32, #tpu.memory_space<vmem>>, %arg3: memref<1x1xf32, #tpu.memory_space<vmem>>, %arg4: memref<1x1xf32, #tpu.memory_space<vmem>>, %arg5: memref<1x1xf32, #tpu.memory_space<vmem>>, %arg6: memref<1x1xf32, #tpu.memory_space<vmem>>) attributes {dimension_semantics = [#tpu.dimension_semantics<arbitrary>], iteration_bounds = array<i64: 1>, scalar_prefetch = 0 : i64, scratch_operands = 3 : i64, tpu.core_type = #tpu.core_type<tc>, window_params = [{transform_indices = @transform_0, window_bounds = array<i64: 1, 1>}, {transform_indices = @transform_1, window_bounds = array<i64: 2, 8, 128>}, {pipeline_mode = #tpu.pipeline_mode<synchronous>, transform_indices = @transform_2, window_bounds = array<i64: 1, 1>}]} {
    %c0_i32 = arith.constant 0 : i32
    %0 = arith.cmpi eq, %arg0, %c0_i32 : i32
    %1 = arith.extui %0 : i1 to i32
    %c0_i32_0 = arith.constant 0 : i32
    %2 = arith.cmpi ne, %1, %c0_i32_0 : i32
    scf.if %2 {
      %cst_30 = arith.constant 0.000000e+00 : f32
      %59 = vector.broadcast %cst_30 : f32 to vector<1x1xf32>
      %c0_31 = arith.constant 0 : index
      %c0_32 = arith.constant 0 : index
      %60 = vector.load %arg4[%c0_31, %c0_32] : memref<1x1xf32, #tpu.memory_space<vmem>>, vector<1x1xf32>
      tpu.vector_store %arg4[%c0_31, %c0_32], %59 {strides = array<i32>} : memref<1x1xf32, #tpu.memory_space<vmem>>, vector<1x1xf32>,
      %cst_33 = arith.constant 0.000000e+00 : f32
      %61 = vector.broadcast %cst_33 : f32 to vector<1x1xf32>
      %c0_34 = arith.constant 0 : index
      %c0_35 = arith.constant 0 : index
      %62 = vector.load %arg5[%c0_34, %c0_35] : memref<1x1xf32, #tpu.memory_space<vmem>>, vector<1x1xf32>
      tpu.vector_store %arg5[%c0_34, %c0_35], %61 {strides = array<i32>} : memref<1x1xf32, #tpu.memory_space<vmem>>, vector<1x1xf32>,
      %cst_36 = arith.constant 0.000000e+00 : f32
      %63 = vector.broadcast %cst_36 : f32 to vector<1x1xf32>
      %c0_37 = arith.constant 0 : index
      %c0_38 = arith.constant 0 : index
      %64 = vector.load %arg6[%c0_37, %c0_38] : memref<1x1xf32, #tpu.memory_space<vmem>>, vector<1x1xf32>
      tpu.vector_store %arg6[%c0_37, %c0_38], %63 {strides = array<i32>} : memref<1x1xf32, #tpu.memory_space<vmem>>, vector<1x1xf32>,
    } else {
    }
    %c0 = arith.constant 0 : index
    %c0_1 = arith.constant 0 : index
    %3 = memref.load %arg1[%c0, %c0_1] : memref<1x1xf32, #tpu.memory_space<smem>>
    %c0_2 = arith.constant 0 : index
    %c0_3 = arith.constant 0 : index
    %c0_4 = arith.constant 0 : index
    %4 = vector.load %arg2[%c0_2, %c0_3, %c0_4] : memref<2x8x128xf32, #tpu.memory_space<vmem>>, vector<1x8x128xf32>
    %5 = vector.shape_cast %4 : vector<1x8x128xf32> to vector<8x128xf32>
    %c1 = arith.constant 1 : index
    %c0_5 = arith.constant 0 : index
    %c0_6 = arith.constant 0 : index
    %6 = vector.load %arg2[%c1, %c0_5, %c0_6] : memref<2x8x128xf32, #tpu.memory_space<vmem>>, vector<1x8x128xf32>
    %7 = vector.shape_cast %6 : vector<1x8x128xf32> to vector<8x128xf32>
    %8 = vector.broadcast %3 : f32 to vector<8x128xf32>
    %9 = arith.mulf %5, %8 : vector<8x128xf32>
    %10 = math.exp %9 : vector<8x128xf32>
    %11 = tpu.iota {dimensions = array<i32: 0>} : vector<128x128xi32>
    %12 = tpu.iota {dimensions = array<i32: 1>} : vector<128x128xi32>
    %13 = arith.cmpi sle, %11, %12 : vector<128x128xi32>
    %14 = arith.extui %13 : vector<128x128xi1> to vector<128x128xi32>
    %15 = arith.sitofp %14 : vector<128x128xi32> to vector<128x128xf32>
    %cst = arith.constant dense<0.000000e+00> : vector<8x128xf32>
    %16 = tpu.matmul %10, %15, %cst {dimension_numbers = #tpu.dot_dimension_numbers<[1], [0], [0], [1], [0, 0, 1, 1], [], []>, precision = #tpu.contract_precision<fp32>} : vector<8x128xf32>, vector<128x128xf32>, vector<8x128xf32> -> vector<8x128xf32>
    %17 = tpu.iota {dimensions = array<i32: 0>} : vector<8x8xi32>
    %18 = tpu.iota {dimensions = array<i32: 1>} : vector<8x8xi32>
    %19 = arith.cmpi slt, %18, %17 : vector<8x8xi32>
    %20 = arith.extui %19 : vector<8x8xi1> to vector<8x8xi32>
    %21 = arith.sitofp %20 : vector<8x8xi32> to vector<8x8xf32>
    %cst_7 = arith.constant dense<0.000000e+00> : vector<8x128xf32>
    %22 = tpu.matmul %21, %16, %cst_7 {dimension_numbers = #tpu.dot_dimension_numbers<[1], [0], [0], [1], [0, 0, 1, 1], [], []>, precision = #tpu.contract_precision<fp32>} : vector<8x8xf32>, vector<8x128xf32>, vector<8x128xf32> -> vector<8x128xf32>
    %23 = vector.extract_strided_slice %22 {offsets = [0, 127], sizes = [8, 1], strides = [1, 1]} : vector<8x128xf32> to vector<8x1xf32>
    %24 = vector.broadcast %23 : vector<8x1xf32> to vector<8x128xf32>
    %25 = arith.addf %16, %24 : vector<8x128xf32>
    %c0_8 = arith.constant 0 : index
    %c0_9 = arith.constant 0 : index
    %26 = vector.load %arg4[%c0_8, %c0_9] : memref<1x1xf32, #tpu.memory_space<vmem>>, vector<1x1xf32>
    %27 = vector.broadcast %26 : vector<1x1xf32> to vector<8x128xf32>
    %28 = arith.addf %25, %27 : vector<8x128xf32>
    %29 = math.log %28 : vector<8x128xf32>
    %30 = arith.subf %9, %29 : vector<8x128xf32>
    %31 = arith.mulf %30, %7 : vector<8x128xf32>
    %cst_10 = arith.constant dense<0.000000e+00> : vector<8xf32>
    %32 = vector.multi_reduction <add>, %31, %cst_10 [1] : vector<8x128xf32> to vector<8xf32>
    %33 = vector.shape_cast %32 : vector<8xf32> to vector<8x1xf32>
    %c0_11 = arith.constant 0 : index
    %c0_12 = arith.constant 0 : index
    %34 = vector.load %arg5[%c0_11, %c0_12] : memref<1x1xf32, #tpu.memory_space<vmem>>, vector<1x1xf32>
    %cst_13 = arith.constant dense<0.000000e+00> : vector<1xf32>
    %35 = vector.multi_reduction <add>, %33, %cst_13 [0] : vector<8x1xf32> to vector<1xf32>
    %36 = vector.shape_cast %35 : vector<1xf32> to vector<1x1xf32>
    %37 = arith.addf %34, %36 : vector<1x1xf32>
    %c0_14 = arith.constant 0 : index
    %c0_15 = arith.constant 0 : index
    %38 = vector.load %arg5[%c0_14, %c0_15] : memref<1x1xf32, #tpu.memory_space<vmem>>, vector<1x1xf32>
    tpu.vector_store %arg5[%c0_14, %c0_15], %37 {strides = array<i32>} : memref<1x1xf32, #tpu.memory_space<vmem>>, vector<1x1xf32>,
    %cst_16 = arith.constant 0.000000e+00 : f32
    %39 = vector.broadcast %cst_16 : f32 to vector<8x128xf32>
    %40 = arith.cmpf one, %7, %39 : vector<8x128xf32>
    %41 = arith.extui %40 : vector<8x128xi1> to vector<8x128xi32>
    %42 = arith.sitofp %41 : vector<8x128xi32> to vector<8x128xf32>
    %cst_17 = arith.constant dense<0.000000e+00> : vector<8xf32>
    %43 = vector.multi_reduction <add>, %42, %cst_17 [1] : vector<8x128xf32> to vector<8xf32>
    %44 = vector.shape_cast %43 : vector<8xf32> to vector<8x1xf32>
    %c0_18 = arith.constant 0 : index
    %c0_19 = arith.constant 0 : index
    %45 = vector.load %arg6[%c0_18, %c0_19] : memref<1x1xf32, #tpu.memory_space<vmem>>, vector<1x1xf32>
    %cst_20 = arith.constant dense<0.000000e+00> : vector<1xf32>
    %46 = vector.multi_reduction <add>, %44, %cst_20 [0] : vector<8x1xf32> to vector<1xf32>
    %47 = vector.shape_cast %46 : vector<1xf32> to vector<1x1xf32>
    %48 = arith.addf %45, %47 : vector<1x1xf32>
    %c0_21 = arith.constant 0 : index
    %c0_22 = arith.constant 0 : index
    %49 = vector.load %arg6[%c0_21, %c0_22] : memref<1x1xf32, #tpu.memory_space<vmem>>, vector<1x1xf32>
    tpu.vector_store %arg6[%c0_21, %c0_22], %48 {strides = array<i32>} : memref<1x1xf32, #tpu.memory_space<vmem>>, vector<1x1xf32>,
    %c0_23 = arith.constant 0 : index
    %c0_24 = arith.constant 0 : index
    %50 = vector.load %arg4[%c0_23, %c0_24] : memref<1x1xf32, #tpu.memory_space<vmem>>, vector<1x1xf32>
    %51 = vector.extract_strided_slice %16 {offsets = [0, 127], sizes = [8, 1], strides = [1, 1]} : vector<8x128xf32> to vector<8x1xf32>
    %cst_25 = arith.constant dense<0.000000e+00> : vector<1xf32>
    %52 = vector.multi_reduction <add>, %51, %cst_25 [0] : vector<8x1xf32> to vector<1xf32>
    %53 = vector.shape_cast %52 : vector<1xf32> to vector<1x1xf32>
    %54 = arith.addf %50, %53 : vector<1x1xf32>
    %c0_26 = arith.constant 0 : index
    %c0_27 = arith.constant 0 : index
    %55 = vector.load %arg4[%c0_26, %c0_27] : memref<1x1xf32, #tpu.memory_space<vmem>>, vector<1x1xf32>
    tpu.vector_store %arg4[%c0_26, %c0_27], %54 {strides = array<i32>} : memref<1x1xf32, #tpu.memory_space<vmem>>, vector<1x1xf32>,
    %c0_i32_28 = arith.constant 0 : i32
    %56 = arith.cmpi eq, %arg0, %c0_i32_28 : i32
    %57 = arith.extui %56 : i1 to i32
    %c0_i32_29 = arith.constant 0 : i32
    %58 = arith.cmpi ne, %57, %c0_i32_29 : i32
    scf.if %58 {
      %c0_30 = arith.constant 0 : index
      %c0_31 = arith.constant 0 : index
      %59 = vector.load %arg5[%c0_30, %c0_31] : memref<1x1xf32, #tpu.memory_space<vmem>>, vector<1x1xf32>
      %cst_32 = arith.constant 0.000000e+00 : f32
      %60 = vector.broadcast %cst_32 : f32 to vector<1x1xf32>
      %61 = arith.subf %60, %59 : vector<1x1xf32>
      %c0_33 = arith.constant 0 : index
      %c0_34 = arith.constant 0 : index
      %62 = vector.load %arg6[%c0_33, %c0_34] : memref<1x1xf32, #tpu.memory_space<vmem>>, vector<1x1xf32>
      %63 = arith.divf %61, %62 : vector<1x1xf32>
      %c0_35 = arith.constant 0 : index
      %c0_36 = arith.constant 0 : index
      %64 = vector.load %arg3[%c0_35, %c0_36] : memref<1x1xf32, #tpu.memory_space<vmem>>, vector<1x1xf32>
      tpu.vector_store %arg3[%c0_35, %c0_36], %63 {strides = array<i32>} : memref<1x1xf32, #tpu.memory_space<vmem>>, vector<1x1xf32>,
    } else {
    }
    return
  }
  func.func @transform_0(%arg0: i32) -> (i32, i32) {
    %c0_i32 = arith.constant 0 : i32
    %c0_i32_0 = arith.constant 0 : i32
    %c0_i32_1 = arith.constant 0 : i32
    return %c0_i32, %c0_i32_0 : i32, i32
  }
  func.func @transform_1(%arg0: i32) -> (i32, i32, i32) {
    %c0_i32 = arith.constant 0 : i32
    %c0_i32_0 = arith.constant 0 : i32
    %c0_i32_1 = arith.constant 0 : i32
    return %c0_i32, %arg0, %c0_i32_0 : i32, i32, i32
  }
  func.func @transform_2(%arg0: i32) -> (i32, i32) {
    %c0_i32 = arith.constant 0 : i32
    %c0_i32_0 = arith.constant 0 : i32
    %c0_i32_1 = arith.constant 0 : i32
    return %c0_i32, %c0_i32_0 : i32, i32
  }
}

</mosaic_0001>

<bundles_post_ra>
// kernel: tpu_custom_call.1
= control target key start
LH: loop header
LB: loop body
LE: loop exit
PB: predicated region body
PF: predicated region fallthrough
CT: control target
= control target key end

     0   :  { %8 = vsyncpa [#allocation7], 0  ;;  %s2496_s0 = inlined_call_operand.<no memory space> [shape: f32[1,1], index: 0, kind: input, shape index: {}]   ;;  %s2497_s1 = inlined_call_operand.hbm [shape: f32[2,8,128], index: 1, kind: input, shape index: {}]   ;;  %s2498_s2 = inlined_call_operand.hbm [shape: f32[1,1], index: 2, kind: output, shape index: {}]  }
   0x1   :  { %9 = vsyncpa [#allocation8], 0  ;;  %s1958_s9 = smov [#allocation6]   ;;  %s1910_s13 = scalar_lea.hbm %s2497_s1, 256 }
   0x2   :  { %s17_s10 = sshll.u32 %s1958_s9, 4  ;;  %p1911_p0 = scmp.ne.s32.totalorder %s2497_s1, %s1910_s13  ;;  %s18_s10 = int_to_ptr.vmem [resolvable:$true] %s17_s10 }
   0x3   :  { %p1914_p1 = scmp.lt.u32.totalorder %s1910_s13, %s2497_s1 }
   0x5   :  { %p1916_p2 = pnand %p1914_p1, %p1911_p0 }
   0x7   :  { %1919 = shalt.err (!%p1916_p2)
}
   0x8   :  { %s1920_s18 = scalar_lea.vmem %s18_s10, 256  ;;  %p1925_p4 = scmp.lt.s32.totalorder %s18_s10, %s18_s10 }
   0x9   :  { %p1921_p3 = scmp.ne.s32.totalorder %s18_s10, %s1920_s18  ;;  %p1926_p5 = scmp.lt.s32.totalorder %s1920_s18, %s1920_s18 }
   0xb   :  { %p1927_p6 = por %p1926_p5, %p1925_p4 }
   0xd   :  { %p1928_p7 = pnand %p1927_p6, %p1921_p3 }
   0xf   :  { %1931 = shalt.err (!%p1928_p7)
}
  0x10   :  { %s1959_s19 = smov 128   ;;  %s1960_s20 = smov 8  }
  0x11   :  { %23 = dma.hbm_to_vmem [thread:$0]  %s2497_s1, 256, %s18_s10, [#allocation7], %s1959_s19, %s1959_s19, %s1960_s20  }
  0x12   :  { %1954 = dma.done.wait [#allocation7], 256  }
  0x13   :  { %1955 = vsyncadd [#allocation7], 4294967040  ;;  %v43_v0 = vlaneseq  ;;  %v1961_v1 = vmov 0.0|0.0   ;;  %vm2499_vm0 = vmmov 0   ;;  %v1963_v4 = vmov 0.0   ;;  %v36_v21 = vld [vmem:[#allocation6] sm:$0xff] }
  0x14   :  { %1728 = vmatprep.subr.bf16.mxu1 %v1961_v1  ;;  %1800 = vmatprep.subr.bf16.mxu0 %v1961_v1  ;;  %v1964_v11 = vmov 1.0|1.0   ;;  %v39_v22 = vstv %s2496_s0  ;;  %s1968_s0 = smov 1   ;;  %s1969_s24 = smov [#allocation9]  }
  0x15   :  { %v1999_v2 = vshrl.u32 %v43_v0, 7  ;;  %v2001_v3 = vand.u32 127, %v43_v0  ;;  %1520 = vmatprep.mubr.msk.f32.mxu1 %vm2499_vm0, %v1963_v4  ;;  %1625 = vmatprep.mubr.msk.f32.mxu0 %vm2499_vm0, %v1963_v4  ;;  %v2155_v27 = vmul.f32 %v39_v22, %v36_v21  ;;  %s1295_s25 = sshll.u32 %s1969_s24, 4  ;;  %s1296_s25 = int_to_ptr.vmem [resolvable:$true] %s1295_s25 }
  0x16   :  { %s1932_s26 = scalar_lea.vmem %s1296_s25, 16  ;;  %s1936_s27 = scalar_lea.vmem %s1296_s25, 32 }
  0x17   :  { %v45_v5 = vadd.s32 8, %v1999_v2  ;;  %vm62_vm1 = vcmp.le.s32.totalorder %v1999_v2, %v2001_v3  ;;  %v2011_v6 = vadd.s32 16, %v1999_v2  ;;  %v2014_v7 = vadd.s32 24, %v1999_v2  ;;  %p1933_p8 = scmp.ne.s32.totalorder %s1296_s25, %s1932_s26  ;;  %p1937_p9 = scmp.lt.s32.totalorder %s1296_s25, %s1296_s25 }
  0x18   :  { %v2017_v8 = vadd.s32 32, %v1999_v2  ;;  %v2025_v9 = vadd.s32 40, %v1999_v2  ;;  %v2059_v13 = vadd.s32 48, %v1999_v2  ;;  %v2062_v14 = vadd.s32 56, %v1999_v2  ;;  %p1938_p10 = scmp.lt.s32.totalorder %s1936_s27, %s1932_s26 }
  0x19   :  { %vm63_vm2 = vcmp.le.s32.totalorder %v45_v5, %v2001_v3  ;;  %vm64_vm3 = vcmp.le.s32.totalorder %v2011_v6, %v2001_v3  ;;  %vm65_vm4 = vcmp.le.s32.totalorder %v2014_v7, %v2001_v3  ;;  %v2087_v16 = vadd.s32 64, %v1999_v2 }
  0x1a   :  { %vm2032_vm5 = vmpackc.low %vm63_vm2, %vm62_vm1  ;;  %vm66_vm7 = vcmp.le.s32.totalorder %v2017_v8, %v2001_v3  ;;  %vm67_vm8 = vcmp.le.s32.totalorder %v2025_v9, %v2001_v3  ;;  %vm68_vm10 = vcmp.le.s32.totalorder %v2059_v13, %v2001_v3  ;;  %vm69_vm11 = vcmp.le.s32.totalorder %v2062_v14, %v2001_v3  ;;  %p1939_p11 = por %p1938_p10, %p1937_p9 }
  0x1b   :  { %1730 = vmatpush3.bf16.msk.msra.mxu1 %vm2032_vm5, %v1964_v11  ;;  %1802 = vmatpush3.bf16.msk.msra.mxu0 %vm2032_vm5, %v1964_v11  ;;  %vm2050_vm6 = vmpackc.low %vm65_vm4, %vm64_vm3  ;;  %v2090_v17 = vadd.s32 72, %v1999_v2  ;;  %vm2502_vm13 = vcmp.le.s32.totalorder %v2087_v16, %v2001_v3  ;;  %v2115_v19 = vadd.s32 80, %v1999_v2  ;;  %v2118_v20 = vadd.s32 88, %v1999_v2 }
  0x1c   :  { %1731 = vmatprep.subr.bf16.mxu1 %v1961_v1  ;;  %1803 = vmatprep.subr.bf16.mxu0 %v1961_v1  ;;  %vm2078_vm9 = vmpackc.low %vm67_vm8, %vm66_vm7  ;;  %v1304_v23 = vsel %vm62_vm1, 1.0, %v1963_v4  ;;  %v2146_v25 = vadd.s32 96, %v1999_v2  ;;  %v2153_v26 = vadd.s32 104, %v1999_v2  ;;  %v1305_v28 = vsel %vm63_vm2, 1.0, %v1963_v4  ;;  %p1940_p12 = pnand %p1939_p11, %p1933_p8 }
  0x1d   :  { %vm2106_vm12 = vmpackc.low %vm69_vm11, %vm68_vm10  ;;  %vm2501_vm14 = vcmp.le.s32.totalorder %v2090_v17, %v2001_v3  ;;  %vm72_vm1 = vcmp.le.s32.totalorder %v2115_v19, %v2001_v3  ;;  %vm2503_vm0 = vcmp.le.s32.totalorder %v2118_v20, %v2001_v3  ;;  %v41_v29 = vmul.f32 1.442695, %v2155_v27 }
  0x1e   :  { %vm2141_vm15 = vmpackc.low %vm2501_vm14, %vm2502_vm13  ;;  %v2167_v30 = vsub.f32 %v1304_v23, %v1304_v23  ;;  %vm74_vm14 = vcmp.le.s32.totalorder %v2146_v25, %v2001_v3  ;;  %vm75_vm13 = vcmp.le.s32.totalorder %v2153_v26, %v2001_v3  ;;  %v2186_v32 = vadd.s32 112, %v1999_v2 }
  0x1f   :  { %1733 = vmatpush3.bf16.msk.msra.mxu1 %vm2050_vm6, %v1964_v11  ;;  %1805 = vmatpush3.bf16.msk.msra.mxu0 %vm2050_vm6, %v1964_v11  ;;  %vm2177_vm2 = vmpackc.low %vm2503_vm0, %vm72_vm1  ;;  %v2189_v33 = vadd.s32 120, %v1999_v2  ;;  %1904 = vpow2.f32 %v41_v29  ;;  %v2191_v34 = vsub.f32 %v1305_v28, %v1305_v28  ;;  %v1306_v35 = vsel %vm64_vm3, 1.0, %v1963_v4 }
  0x20   :  { %1734 = vmatprep.subr.bf16.mxu1 %v1961_v1  ;;  %1806 = vmatprep.subr.bf16.mxu0 %v1961_v1  ;;  %v1307_v36 = vsel %vm65_vm4, 1.0, %v1963_v4  ;;  %vm2215_vm0 = vmpackc.low %vm75_vm13, %vm74_vm14  ;;  %v204_v38 = vand.u32 4294901760, %v2167_v30  ;;  %vm76_vm3 = vcmp.le.s32.totalorder %v2186_v32, %v2001_v3  ;;  %v1308_v40 = vsel %vm66_vm7, 1.0, %v1963_v4 }
  0x21   :  { %vm77_vm4 = vcmp.le.s32.totalorder %v2189_v33, %v2001_v3  ;;  %v211_v39 = vand.u32 4294901760, %v2191_v34  ;;  %v2229_v41 = vsub.f32 %v1306_v35, %v1306_v35  ;;  %v2231_v42 = vsub.f32 %v1307_v36, %v1307_v36 }
  0x22   :  { %v1309_v43 = vsel %vm67_vm8, 1.0, %v1963_v4  ;;  %vm2251_vm7 = vmpackc.low %vm77_vm4, %vm76_vm3  ;;  %v205_v45 = vsub.f32 %v2167_v30, %v204_v38  ;;  %v2256_v46 = vsub.f32 %v1308_v40, %v1308_v40  ;;  %v1310_v47 = vsel %vm68_vm10, 1.0, %v1963_v4 }
  0x23   :  { %1736 = vmatpush3.bf16.msk.msra.mxu1 %vm2078_vm9, %v1964_v11  ;;  %1808 = vmatpush3.bf16.msk.msra.mxu0 %vm2078_vm9, %v1964_v11  ;;  %v212_v48 = vsub.f32 %v2191_v34, %v211_v39  ;;  %v1311_v49 = vsel %vm69_vm11, 1.0, %v1963_v4  ;;  %v218_v51 = vand.u32 4294901760, %v2229_v41  ;;  %v225_v52 = vand.u32 4294901760, %v2231_v42 }
  0x24   :  { %1737 = vmatprep.subr.bf16.mxu1 %v1961_v1  ;;  %1809 = vmatprep.subr.bf16.mxu0 %v1961_v1  ;;  %v2269_v53 = vsub.f32 %v1309_v43, %v1309_v43  ;;  %v2277_v54 = vsub.f32 %v1310_v47, %v1310_v47  ;;  %v206_v56 = vand.u32 4294901760, %v205_v45  ;;  %v232_v57 = vand.u32 4294901760, %v2256_v46 }
  0x25   :  { %v2284_v58 = vsub.f32 %v1311_v49, %v1311_v49  ;;  %v213_v59 = vand.u32 4294901760, %v212_v48  ;;  %vm2520_vm8 = vcmp.le.s32.totalorder %v2087_v16, %v2001_v3  ;;  %vm2521_vm10 = vcmp.le.s32.totalorder %v2090_v17, %v2001_v3 }
  0x26   :  { %v1312_v60 = vsel %vm2520_vm8, 1.0, %v1963_v4  ;;  %v1313_v61 = vsel %vm2521_vm10, 1.0, %v1963_v4  ;;  %v239_v63 = vand.u32 4294901760, %v2269_v53  ;;  %v1825_v0 = vpack.c.bf16 %v211_v39, %v204_v38 }
  0x27   :  { %1739 = vmatpush3.bf16.msk.msra.mxu1 %vm2106_vm12, %v1964_v11  ;;  %1811 = vmatpush3.bf16.msk.msra.mxu0 %vm2106_vm12, %v1964_v11  ;;  %v219_v5 = vsub.f32 %v2229_v41, %v218_v51  ;;  %v226_v6 = vsub.f32 %v2231_v42, %v225_v52  ;;  %v246_v7 = vand.u32 4294901760, %v2277_v54  ;;  %v253_v9 = vand.u32 4294901760, %v2284_v58 }
  0x28   :  { %1740 = vmatprep.subr.bf16.mxu1 %v1961_v1  ;;  %1812 = vmatprep.subr.bf16.mxu0 %v1961_v1  ;;  %v2303_v13 = vsub.f32 %v1312_v60, %v1312_v60  ;;  %v2305_v14 = vsub.f32 %v1313_v61, %v1313_v61  ;;  %v1314_v16 = vsel %vm72_vm1, 1.0, %v1963_v4  ;;  %vm2522_vm11 = vcmp.le.s32.totalorder %v2118_v20, %v2001_v3 }
  0x29   :  { %v1905_v50 = vpop.eup %1904  ;;  %v1315_v17 = vsel %vm2522_vm11, 1.0, %v1963_v4  ;;  %v1753_v22 = vpack.c.bf16 %v213_v59, %v206_v56  ;;  %v233_v23 = vsub.f32 %v2256_v46, %v232_v57  ;;  %v220_v28 = vand.u32 4294901760, %v219_v5 }
  0x2a   :  { %v2281_v55 = vand.u32 4294901760, %v1905_v50  ;;  %v227_v29 = vand.u32 4294901760, %v226_v6  ;;  %v1828_v35 = vpack.c.bf16 %v225_v52, %v218_v51  ;;  %v240_v36 = vsub.f32 %v2269_v53, %v239_v63 }
  0x2b   :  { %1742 = vmatpush3.bf16.msk.msra.mxu1 %vm2141_vm15, %v1964_v11  ;;  %1814 = vmatpush3.bf16.msk.msra.mxu0 %vm2141_vm15, %v1964_v11  ;;  %vm2523_vm8 = vmmov 0   ;;  %v260_v20 = vand.u32 4294901760, %v2303_v13  ;;  %v267_v38 = vand.u32 4294901760, %v2305_v14  ;;  %v2323_v39 = vsub.f32 %v1314_v16, %v1314_v16 }
  0x2c   :  { %1743 = vmatprep.subr.bf16.mxu1 %v1961_v1  ;;  %1815 = vmatprep.subr.bf16.mxu0 %v1961_v1  ;;  %v2295_v62 = vsub.f32 %v1905_v50, %v2281_v55  ;;  %v2325_v40 = vsub.f32 %v1315_v17, %v1315_v17  ;;  %v1316_v43 = vsel %vm74_vm14, 1.0, %v1963_v4  ;;  %v1317_v45 = vsel %vm75_vm13, 1.0, %v1963_v4 }
  0x2d   :  { %v234_v47 = vand.u32 4294901760, %v233_v23  ;;  %v1831_v48 = vpack.c.bf16 %v239_v63, %v232_v57  ;;  %v1756_v49 = vpack.c.bf16 %v227_v29, %v220_v28  ;;  %v241_v50 = vand.u32 4294901760, %v240_v36 }
  0x2e   :  { %v193_v8 = vand.u32 4294901760, %v2295_v62  ;;  %v247_v51 = vsub.f32 %v2277_v54, %v246_v7  ;;  %v254_v52 = vsub.f32 %v2284_v58, %v253_v9  ;;  %v274_v25 = vand.u32 4294901760, %v2323_v39 }
  0x2f   :  { %1745 = vmatpush3.bf16.msk.msra.mxu1 %vm2177_vm2, %v1964_v11  ;;  %1817 = vmatpush3.bf16.msk.msra.mxu0 %vm2177_vm2, %v1964_v11  ;;  %v281_v26 = vand.u32 4294901760, %v2325_v40  ;;  %v2341_v56 = vsub.f32 %v1316_v43, %v1316_v43  ;;  %v2343_v59 = vsub.f32 %v1317_v45, %v1317_v45  ;;  %v1318_v57 = vsel %vm76_vm3, 1.0, %v1963_v4 }
  0x30   :  { %1746 = vmatprep.subr.bf16.mxu1 %v1961_v1  ;;  %1818 = vmatprep.subr.bf16.mxu0 %v1961_v1  ;;  %v194_v21 = vsub.f32 %v2295_v62, %v193_v8  ;;  %v1319_v60 = vsel %vm77_vm4, 1.0, %v1963_v4  ;;  %v1834_v61 = vpack.c.bf16 %v253_v9, %v246_v7  ;;  %v261_v63 = vsub.f32 %v2303_v13, %v260_v20 }
  0x31   :  { %v248_v5 = vand.u32 4294901760, %v247_v51  ;;  %v255_v6 = vand.u32 4294901760, %v254_v52  ;;  %v288_v32 = vand.u32 4294901760, %v2341_v56  ;;  %v295_v16 = vand.u32 4294901760, %v2343_v59 }
  0x32   :  { %v195_v19 = vand.u32 4294901760, %v194_v21  ;;  %v2361_v33 = vsub.f32 %v1318_v57, %v1318_v57  ;;  %v2363_v7 = vsub.f32 %v1319_v60, %v1319_v60  ;;  %v262_v9 = vand.u32 4294901760, %v261_v63 }
  0x33   :  { %1748 = vmatpush3.bf16.msk.msra.mxu1 %vm2215_vm0, %v1964_v11  ;;  %1820 = vmatpush3.bf16.msk.msra.mxu0 %vm2215_vm0, %v1964_v11  ;;  %v1837_v17 = vpack.c.bf16 %v267_v38, %v260_v20  ;;  %v1762_v21 = vpack.c.bf16 %v255_v6, %v248_v5  ;;  %v275_v23 = vsub.f32 %v2323_v39, %v274_v25 }
  0x34   :  { %1749 = vmatprep.subr.bf16.mxu1 %v1961_v1  ;;  %1821 = vmatprep.subr.bf16.mxu0 %v1961_v1  ;;  %v282_v28 = vsub.f32 %v2325_v40, %v281_v26  ;;  %v302_v29 = vand.u32 4294901760, %v2361_v33  ;;  %v1840_v36 = vpack.c.bf16 %v281_v26, %v274_v25  ;;  %v296_v45 = vsub.f32 %v2343_v59, %v295_v16 }
  0x35   :  { %v1777_v63 = vpack.c.bf16 %v2191_v34, %v2167_v30  ;;  %v1783_v10 = vpack.c.bf16 %v2269_v53, %v2256_v46  ;;  %v1786_v12 = vpack.c.bf16 %v2284_v58, %v2277_v54  ;;  %v1789_v15 = vpack.c.bf16 %v2305_v14, %v2303_v13 }
  0x36   :  { %v283_v43 = vand.u32 4294901760, %v282_v28  ;;  %v303_v51 = vsub.f32 %v2361_v33, %v302_v29  ;;  %v1792_v18 = vpack.c.bf16 %v2325_v40, %v2323_v39  ;;  %v1795_v24 = vpack.c.bf16 %v2343_v59, %v2341_v56 }
  0x37   :  { %1751 = vmatpush3.bf16.msk.msra.mxu1 %vm2251_vm7, %v1964_v11  ;;  %1823 = vmatpush3.bf16.msk.msra.mxu0 %vm2251_vm7, %v1964_v11  ;;  %v1798_v30 = vpack.c.bf16 %v2363_v7, %v2361_v33 }
  0x38   :  { %1752 = vmatprep.subr.bf16.mxu1 %v1961_v1  ;;  %1824 = vmatprep.subr.bf16.mxu0 %v1961_v1  ;;  %v304_v26 = vand.u32 4294901760, %v303_v51 }
  0x3a   :  { %1626 = vmatmul.mubr.f32.vlgmr.msra.gmra.mrb[0].mxu0 %v193_v8  ;;  %1521 = vmatmul.mubr.f32.vlgmr.msra.gmra.mrb[0].mxu1 %v195_v19  ;;  %v268_v8 = vsub.f32 %v2305_v14, %v267_v38  ;;  %v289_v19 = vsub.f32 %v2341_v56, %v288_v32  ;;  %v276_v38 = vand.u32 4294901760, %v275_v23  ;;  %v1965_v14 = vmov 127  }
  0x3b   :  { %1826 = vmatpush3.bf16.msra.mxu0 %v1825_v0  ;;  %1660 = vmatprep.mubr.msk.f32.mxu0 %vm2523_vm8, %v1963_v4  ;;  %v1759_v0 = vpack.c.bf16 %v241_v50, %v234_v47  ;;  %v297_v50 = vand.u32 4294901760, %v296_v45 }
  0x3c   :  { %1827 = vmatprep.subr.bf16.mxu0 %v1961_v1  ;;  %1754 = vmatpush3.bf16.msra.mxu1 %v1753_v22  ;;  %v269_v22 = vand.u32 4294901760, %v268_v8  ;;  %v290_v47 = vand.u32 4294901760, %v289_v19  ;;  %v1966_v8 = vmov 0  }
  0x3d   :  { %1755 = vmatprep.subr.bf16.mxu1 %v1961_v1  ;;  %1555 = vmatprep.mubr.msk.f32.mxu1 %vm2523_vm8, %v1963_v4 }
  0x3e   :  { %v1765_v20 = vpack.c.bf16 %v269_v22, %v262_v9  ;;  %v1771_v25 = vpack.c.bf16 %v297_v50, %v290_v47  ;;  %1902 = vset.pattern.permute.xlu0 %v1965_v14 }
  0x3f   :  { %1829 = vmatpush3.bf16.msra.mxu0 %v1828_v35  ;;  %v309_v35 = vand.u32 4294901760, %v2363_v7 }
  0x40   :  { %1830 = vmatprep.subr.bf16.mxu0 %v1961_v1  ;;  %1757 = vmatpush3.bf16.msra.mxu1 %v1756_v49  ;;  %v1768_v49 = vpack.c.bf16 %v283_v43, %v276_v38  ;;  %v1967_v38 = vmov 1966171168  }
  0x41   :  { %1758 = vmatprep.subr.bf16.mxu1 %v1961_v1  ;;  %v310_v52 = vsub.f32 %v2363_v7, %v309_v35  ;;  %v1846_v60 = vpack.c.bf16 %v309_v35, %v302_v29  ;;  %v1262_v43 = vunpack.c.l.s4 %v1967_v38 }
  0x43   :  { %1832 = vmatpush3.bf16.msra.mxu0 %v1831_v48  ;;  %v1843_v48 = vpack.c.bf16 %v295_v16, %v288_v32  ;;  %v311_v57 = vand.u32 4294901760, %v310_v52  ;;  %v38_v32 = vld [vmem:[#allocation6 + $0x8] sm:$0xff] }
  0x44   :  { %1833 = vmatprep.subr.bf16.mxu0 %v1961_v1  ;;  %1760 = vmatpush3.bf16.msra.mxu1 %v1759_v0  ;;  %v1780_v0 = vpack.c.bf16 %v2231_v42, %v2229_v41 }
  0x45   :  { %1761 = vmatprep.subr.bf16.mxu1 %v1961_v1 }
  0x47   :  { %1835 = vmatpush3.bf16.msra.mxu0 %v1834_v61  ;;  %v1774_v61 = vpack.c.bf16 %v311_v57, %v304_v26 }
  0x48   :  { %1836 = vmatprep.subr.bf16.mxu0 %v1961_v1  ;;  %1763 = vmatpush3.bf16.msra.mxu1 %v1762_v21 }
  0x49   :  { %1764 = vmatprep.subr.bf16.mxu1 %v1961_v1 }
  0x4b   :  { %1838 = vmatpush3.bf16.msra.mxu0 %v1837_v17 }
  0x4c   :  { %1839 = vmatprep.subr.bf16.mxu0 %v1961_v1  ;;  %1766 = vmatpush3.bf16.msra.mxu1 %v1765_v20 }
  0x4d   :  { %1767 = vmatprep.subr.bf16.mxu1 %v1961_v1 }
  0x4f   :  { %1841 = vmatpush3.bf16.msra.mxu0 %v1840_v36 }
  0x50   :  { %1842 = vmatprep.subr.bf16.mxu0 %v1961_v1  ;;  %1769 = vmatpush3.bf16.msra.mxu1 %v1768_v49  ;;  %v1263_v49 = vunpack.c.0.s8 %v1262_v43 }
  0x51   :  { %1770 = vmatprep.subr.bf16.mxu1 %v1961_v1 }
  0x53   :  { %1844 = vmatpush3.bf16.msra.mxu0 %v1843_v48 }
  0x54   :  { %1845 = vmatprep.subr.bf16.mxu0 %v1961_v1  ;;  %1772 = vmatpush3.bf16.msra.mxu1 %v1771_v25  ;;  %v1266_v25 = vsub.s32 %v1263_v49, %v1999_v2 }
  0x55   :  { %1773 = vmatprep.subr.bf16.mxu1 %v1961_v1 }
  0x57   :  { %1847 = vmatpush3.bf16.msra.mxu0 %v1846_v60 }
  0x58   :  { %1848 = vmatprep.subr.bf16.mxu0 %v1961_v1  ;;  %1775 = vmatpush3.bf16.msra.mxu1 %v1774_v61 }
  0x59   :  { %1776 = vmatprep.subr.bf16.mxu1 %v1961_v1 }
  0x5a   :  { %1661 = vmatmul.mubr.f32.vlgmr.msra.gmra.mrb[0].mxu0 %v2281_v55 }
  0x5b   :  { %1850 = vmatpush3.bf16.msk.msra.mxu0 %vm2032_vm5, %v1964_v11  ;;  %1695 = vmatprep.mubr.msk.f32.mxu0 %vm2523_vm8, %v1963_v4  ;;  %vm754_vm5 = vcmask 64512  }
  0x5c   :  { %1851 = vmatprep.subr.bf16.mxu0 %v1961_v1  ;;  %1556 = vmatmul.mubr.f32.vlgmr.msra.gmra.mrb[0].mxu1 %v2281_v55 }
  0x5d   :  { %1778 = vmatpush3.bf16.msra.mxu1 %v1777_v63  ;;  %1590 = vmatprep.mubr.msk.f32.mxu1 %vm2523_vm8, %v1963_v4 }
  0x5e   :  { %1779 = vmatprep.subr.bf16.mxu1 %v1961_v1 }
  0x5f   :  { %1853 = vmatpush3.bf16.msk.msra.mxu0 %vm2050_vm6, %v1964_v11  ;;  %vm31_vm6 = vcmask 0  }
  0x60   :  { %1854 = vmatprep.subr.bf16.mxu0 %v1961_v1  ;;  %32 = vst.msk [vmem:[#allocation2] sm:$0x1] %vm31_vm6, %v1963_v4  ;;  %33 = vst.msk [vmem:[#allocation3] sm:$0x1] %vm31_vm6, %v1963_v4 }
  0x61   :  { %1781 = vmatpush3.bf16.msra.mxu1 %v1780_v0  ;;  %34 = vst.msk [vmem:[#allocation4] sm:$0x1] %vm31_vm6, %v1963_v4 }
  0x62   :  { %1782 = vmatprep.subr.bf16.mxu1 %v1961_v1 }
  0x63   :  { %1856 = vmatpush3.bf16.msk.msra.mxu0 %vm2078_vm9, %v1964_v11  ;;  %vm1237_vm9 = vcmp.ne.f32.partialorder %v38_v32, 0.0 }
  0x64   :  { %1857 = vmatprep.subr.bf16.mxu0 %v1961_v1  ;;  %v1373_v16 = vsel %vm1237_vm9, 1.0, %v1963_v4 }
  0x65   :  { %1784 = vmatpush3.bf16.msra.mxu1 %v1783_v10  ;;  %1240 = vadd.xlane.f32.xlu1 %v1373_v16 }
  0x66   :  { %1785 = vmatprep.subr.bf16.mxu1 %v1961_v1 }
  0x67   :  { %1859 = vmatpush3.bf16.msk.msra.mxu0 %vm2106_vm12, %v1964_v11  ;;  %v1372_v6 = vld [vmem:[#allocation2] ss:$0 sm:$0xff]  ;;  %vm1252_vm12 = vcmask 1048568  }
  0x68   :  { %1860 = vmatprep.subr.bf16.mxu0 %v1961_v1  ;;  %v1242_v57 = vld [vmem:[#allocation4] sm:$0x1] }
  0x69   :  { %1787 = vmatpush3.bf16.msra.mxu1 %v1786_v12  ;;  %v1251_v12 = vld [vmem:[#allocation2] sm:$0x1] }
  0x6a   :  { %1788 = vmatprep.subr.bf16.mxu1 %v1961_v1 }
  0x6b   :  { %1862 = vmatpush3.bf16.msk.msra.mxu0 %vm2141_vm15, %v1964_v11 }
  0x6c   :  { %1863 = vmatprep.subr.bf16.mxu0 %v1961_v1 }
  0x6d   :  { %1790 = vmatpush3.bf16.msra.mxu1 %v1789_v15 }
  0x6e   :  { %1791 = vmatprep.subr.bf16.mxu1 %v1961_v1 }
  0x6f   :  { %1865 = vmatpush3.bf16.msk.msra.mxu0 %vm2177_vm2, %v1964_v11 }
  0x70   :  { %1866 = vmatprep.subr.bf16.mxu0 %v1961_v1 }
  0x71   :  { %1793 = vmatpush3.bf16.msra.mxu1 %v1792_v18 }
  0x72   :  { %1794 = vmatprep.subr.bf16.mxu1 %v1961_v1 }
  0x73   :  { %1868 = vmatpush3.bf16.msk.msra.mxu0 %vm2215_vm0, %v1964_v11  ;;  %vm751_vm0 = vcmp.lt.s32.totalorder %v2001_v3, %v1999_v2 }
  0x74   :  { %1869 = vmatprep.subr.bf16.mxu0 %v1961_v1 }
  0x75   :  { %1796 = vmatpush3.bf16.msra.mxu1 %v1795_v24 }
  0x76   :  { %1797 = vmatprep.subr.bf16.mxu1 %v1961_v1  ;;  %v1368_v1 = vsel %vm751_vm0, 1.0, %v1963_v4 }
  0x77   :  { %1871 = vmatpush3.bf16.msk.msra.mxu0 %vm2251_vm7, %v1964_v11  ;;  %v756_v11 = vsel %vm754_vm5, %v1368_v1, 0 }
  0x78   :  { %1698 = vmatprep.subr.mxu0 %v1963_v4  ;;  %v825_v31 = vsub.f32 %v756_v11, %v756_v11  ;;  %v1227_v11 = vld [vmem:[#allocation3] sm:$0x1] }
  0x79   :  { %1799 = vmatpush3.bf16.msra.mxu1 %v1798_v30 }
  0x7a   :  { %1696 = vmatmul.mubr.f32.vlgmr.msra.gmra.mrb[0].mxu0 %v2281_v55  ;;  %1713 = vmatprep.subr.mxu1 %v1963_v4  ;;  %v826_v34 = vand.u32 4294901760, %v825_v31 }
  0x7b   :  { %1700 = vmatprep.mubr.msk.f32.mxu0 %vm2523_vm8, %v1963_v4 }
  0x7c   :  { %1591 = vmatmul.mubr.f32.vlgmr.msra.gmra.mrb[0].mxu1 %v2295_v62  ;;  %v827_v42 = vsub.f32 %v825_v31, %v826_v34 }
  0x7d   :  { %1715 = vmatprep.mubr.msk.f32.mxu1 %vm2523_vm8, %v1963_v4 }
  0x7e   :  { %v828_v54 = vand.u32 4294901760, %v827_v42 }
 0x14d   :  { %v747_v37 = vpop.f32.mrb[0].mxu0 }
 0x14e   :  { %v1697_v41 = vpop.f32.mrb[1].mxu0 }
 0x14f   :  { %v452_v44 = vpop.f32.mrb[0].mxu1 }
 0x150   :  { %v1872_v46 = vadd.f32 %v747_v37, %v452_v44  ;;  %v1592_v53 = vpop.f32.mrb[1].mxu1 }
 0x152   :  { %v759_v55 = vand.u32 4294901760, %v1872_v46  ;;  %v1253_v21 = vsel %vm1252_vm12, %v1872_v46, 0.0 }
 0x153   :  { %v1254_v22 = vrot.slane %v1253_v21, 4 }
 0x154   :  { %1699 = vmatpush3.msra.mxu0 %v759_v55  ;;  %1714 = vmatpush3.msra.mxu1 %v759_v55  ;;  %v836_v58 = vsub.f32 %v1872_v46, %v759_v55 }
 0x155   :  { %1701 = vmatmul.mubr.f32.vlgmr.msra.gmra.mrb[2].mxu0 %v828_v54  ;;  %1716 = vmatmul.mubr.f32.vlgmr.msra.gmra.mrb[2].mxu1 %v826_v34  ;;  %v1255_v23 = vadd.f32 %v1254_v22, %v1253_v21 }
 0x156   :  { %1718 = vmatprep.subr.mxu1 %v1963_v4  ;;  %v837_v3 = vand.u32 4294901760, %v836_v58  ;;  %1703 = vmatprep.subr.mxu0 %v1963_v4 }
 0x157   :  { %1705 = vmatprep.mubr.msk.f32.mxu0 %vm2523_vm8, %v1963_v4  ;;  %1720 = vmatprep.mubr.msk.f32.mxu1 %vm2523_vm8, %v1963_v4  ;;  %v1256_v35 = vrot.slane %v1255_v23, 2 }
 0x158   :  { %1719 = vmatpush3.msra.mxu1 %v837_v3  ;;  %v838_v62 = vsub.f32 %v836_v58, %v837_v3 }
 0x159   :  { %1723 = vmatprep.subr.mxu1 %v1963_v4  ;;  %v1257_v20 = vadd.f32 %v1256_v35, %v1255_v23 }
 0x15a   :  { %v839_v13 = vand.u32 4294901760, %v838_v62 }
 0x15b   :  { %v1258_v48 = vrot.slane %v1257_v20, 1 }
 0x15c   :  { %1704 = vmatpush3.msra.mxu0 %v839_v13 }
 0x15d   :  { %1706 = vmatmul.mubr.msk.f32.vlgmr.msra.gmra.mrb[2].mxu0 %vm754_vm5, %v1368_v1  ;;  %1708 = vmatprep.subr.mxu0 %v1963_v4  ;;  %v1259_v52 = vadd.f32 %v1258_v48, %v1257_v20 }
 0x15e   :  { %1721 = vmatmul.mubr.msk.f32.vlgmr.msra.gmra.mrb[2].mxu1 %vm754_vm5, %v1368_v1  ;;  %1709 = vmatpush3.msra.mxu0 %v836_v58 }
 0x15f   :  { %1724 = vmatpush3.msra.mxu1 %v759_v55  ;;  %1710 = vmatprep.mubr.msk.f32.mxu0 %vm2523_vm8, %v1963_v4  ;;  %v1267_v61 = vrot.slane %v1259_v52, %v1266_v25 }
 0x160   :  { %1725 = vmatprep.mubr.msk.f32.mxu1 %vm2523_vm8, %v1963_v4  ;;  %v1241_v4 = vpop.xlane.xlu1 %1240 }
 0x161   :  { %v1243_v45 = vrot.slane %v1241_v4, 4  ;;  %v1274_v63 = vrot.slane %v1267_v61, %v1266_v25 }
 0x163   :  { %v1244_v47 = vadd.f32 %v1243_v45, %v1241_v4 }
 0x165   :  { %1711 = vmatmul.mubr.f32.vlgmr.msra.gmra.mrb[2].mxu0 %v825_v31  ;;  %v1245_v50 = vrot.slane %v1244_v47, 2 }
 0x166   :  { %1726 = vmatmul.mubr.msk.f32.vlgmr.msra.gmra.mrb[2].mxu1 %vm754_vm5, %v1368_v1 }
 0x167   :  { %v1246_v51 = vadd.f32 %v1245_v50, %v1244_v47 }
 0x169   :  { %v1247_v26 = vrot.slane %v1246_v51, 1 }
 0x16b   :  { %v1248_v60 = vadd.f32 %v1247_v26, %v1246_v51 }
 0x238   :  { %v980_v39 = vpop.f32.mrb[2].mxu0 }
 0x239   :  { %v1200_v40 = vpop.f32.mrb[2].mxu1  ;;  %v1712_v56 = vpop.f32.mrb[3].mxu0 }
 0x23a   :  { %v1873_v59 = vadd.f32 %v1200_v40, %v980_v39  ;;  %v1727_v5 = vpop.f32.mrb[3].mxu1 }
 0x23c   :  { %1206 = vperm.xlu0 %1902, %v1873_v59  }
 0x240   :  { %1903 = vset.pattern.permute.xlu0 %v1966_v8 }
 0x241   :  { %1217 = vperm.xlu0 %1903, %v1372_v6  }
 0x2bb   :  { %v1207_v33 = vpop.permute.xlu0 %1206 }
 0x2bc   :  { %v1209_v7 = vadd.f32 %v1872_v46, %v1207_v33 }
 0x2c0   :  { %v1218_v9 = vpop.permute.xlu0 %1217 }
 0x2c1   :  { %v1220_v17 = vadd.f32 %v1218_v9, %v1209_v7 }
 0x2c3   :  { %1906 = vlog2.f32 %v1220_v17 }
 0x2cd   :  { %v1907_v28 = vpop.eup %1906 }
 0x2ce   :  { %v1222_v29 = vmul.f32 0.6931472, %v1907_v28 }
 0x2d0   :  { %v1223_v36 = vsub.f32 %v2155_v27, %v1222_v29  ;;  %v1249_v27 = vadd.f32 %v1248_v60, %v1242_v57 }
 0x2d2   :  { %v1224_v19 = vmul.f32 %v1223_v36, %v38_v32  ;;  %1250 = vst.msk [vmem:[#allocation4] sm:$0x1] %vm31_vm6, %v1249_v27 }
 0x2d4   :  { %1225 = vadd.xlane.f32.xlu1 %v1224_v19 }
 0x2d9   :  { %v1285_v34 = vld [vmem:[#allocation4] sm:$0x1] }
 0x2da   :  { %1908 = vrcp.f32 %v1285_v34 }
 0x2e4   :  { %v1909_v44 = vpop.eup %1908 }
 0x2e5   :  { %1275 = vrot.lane.b32.xlu1 %v1274_v63, %s1968_s0 }
 0x361   :  { %v1226_v0 = vpop.xlane.xlu1 %1225 }
 0x362   :  { %v1228_v10 = vrot.slane %v1226_v0, 4 }
 0x364   :  { %v1229_v15 = vadd.f32 %v1228_v10, %v1226_v0 }
 0x365   :  { %v1276_v18 = vpop.permute.xlu1 %1275 }
 0x366   :  { %v1230_v24 = vrot.slane %v1229_v15, 2  ;;  %v1278_v30 = vadd.f32 %v1276_v18, %v1251_v12 }
 0x368   :  { %v1231_v1 = vadd.f32 %v1230_v24, %v1229_v15  ;;  %1279 = vst.msk [vmem:[#allocation2] sm:$0x1] %vm31_vm6, %v1278_v30 }
 0x36a   :  { %v1232_v2 = vrot.slane %v1231_v1, 1 }
 0x36c   :  { %v1233_v31 = vadd.f32 %v1232_v2, %v1231_v1 }
 0x36e   :  { %v1234_v37 = vadd.f32 %v1233_v31, %v1227_v11 }
 0x370   :  { %1236 = vst.msk [vmem:[#allocation3] sm:$0x1] %vm31_vm6, %v1234_v37 }
 0x377   :  { %v1283_v41 = vld [vmem:[#allocation3] sm:$0x1] }
 0x378   :  { %v1284_v42 = vsub.f32 0.0, %v1283_v41 }
 0x37a   :  { %v1287_v46 = vmul.f32 %v1909_v44, %v1284_v42 }
 0x37c   :  { %1288 = vst.msk [vmem:[#allocation9] sm:$0x1] %vm31_vm6, %v1287_v46 }
 0x37d   :  { %1943 = shalt.err (!%p1940_p12)
}
 0x37e   :  { %s1944_s30 = scalar_lea.hbm %s2498_s2, 16 }
 0x37f   :  { %p1945_p13 = scmp.ne.s32.totalorder %s2498_s2, %s1944_s30  ;;  %p1948_p0 = scmp.lt.u32.totalorder %s1944_s30, %s2498_s2 }
 0x381   :  { %p1950_p1 = pnand %p1948_p0, %p1945_p13 }
 0x383   :  { %1953 = shalt.err (!%p1950_p1)
}
 0x384   :  { %1298 = dma.vmem_to_hbm [thread:$0]  %s1296_s25, 16, %s2498_s2, [#allocation8]  }
 0x385   :  { %1956 = dma.done.wait [#allocation8], 16  }
 0x386   :  { %1957 = vsyncadd [#allocation8], 4294967280 }
 0x387   :  { %1302 = vsyncpa [#allocation7], 1 }
 0x388   :  { %1303 = vsyncpa [#allocation8], 1 }

</bundles_post_ra>
